<compile_context>
chip_gen: v7x
topology: tpu7x:2x2x1
jax: 0.10.0
libtpu: 0.0.40
codegen_flags: <defaults>
</compile_context>

<pallas_src>
import functools

import jax
import jax.numpy as jnp
from jax.experimental import pallas as pl
from jax.experimental.pallas import tpu as pltpu

_LANES = 128            # vreg lane width (last dim of the tile)
_SUBLANES = 8           # f32 sublane tile
_MAX_BLOCK_ROWS = 4096  # 4096 x 128 f32 = 2 MiB per block; 4x = 8 MiB VMEM
_MIN_GRID_STEPS = 4     # aim for >= 4 grid steps so megacore can shard


def _scale_kernel(w_ref, x_ref, o_ref):
    # w_ref: (1,) f32 in SMEM  (scalar weight of the bias-free Linear(1, 1)).
    # x_ref / o_ref: (block_rows, 128) f32 in VMEM, lane-dense batch layout.
    # y = x * w  -> single VPU elementwise multiply; no MXU for K = 1.
    o_ref[...] = x_ref[...] * w_ref[0]


def _round_up(a, b):
    return ((a + b - 1) // b) * b


def _choose_block_rows(rows):
    # Target >= _MIN_GRID_STEPS grid steps (keeps both v7x TCs busy), capped
    # at 2 MiB blocks so double-buffered in+out stays <= 8 MiB on all chips.
    target = _round_up(max(1, -(-rows // _MIN_GRID_STEPS)), _SUBLANES)
    return max(_SUBLANES,
               min(_MAX_BLOCK_ROWS, target, _round_up(rows, _SUBLANES)))


def generator_net_forward(x, weight, *, small_n_threshold=16384):
    """Pallas implementation of GeneratorNet.forward.

    x:      (N, 1) float32
    weight: (1, 1) float32  (PyTorch nn.Linear layout, bias=False)
    returns (N, 1) float32  ==  x @ weight.T
    """
    N, f_in = x.shape
    f_out, f_in_w = weight.shape
    assert f_in == 1 and f_out == 1 and f_in_w == 1

    # --- small-N fast path: at GeneratorNet's actual size (N=8) the
    # pallas_call launch + repack is pure overhead; let XLA fuse the multiply.
    if N < small_n_threshold:
        return x * weight[0, 0]

    # --- lane-dense repack: flatten the batch onto the 128-wide lane axis ---
    rows = max(1, -(-N // _LANES))                    # ceil(N / 128)
    padded_rows = _round_up(rows, _SUBLANES)          # (8,128)-aligned array
    padded_total = padded_rows * _LANES

    flat = x.reshape(-1)
    if padded_total != N:                             # pad <= ~2K elements
        flat = jnp.pad(flat, (0, padded_total - N))
    x2d = flat.reshape(padded_rows, _LANES)

    w_flat = weight.reshape(1)                        # scalar weight -> SMEM

    block_rows = _choose_block_rows(padded_rows)
    grid = (pl.cdiv(padded_rows, block_rows),)        # ragged last block OK

    y2d = pl.pallas_call(
        _scale_kernel,
        out_shape=jax.ShapeDtypeStruct((padded_rows, _LANES), x.dtype),
        grid=grid,
        in_specs=[
            # Whole (1,) weight lives in SMEM: no VMEM double-buffer, no DMA
            # descriptor in the steady-state loop.
            pl.BlockSpec(memory_space=pltpu.MemorySpace.SMEM),
            # Lane-dense activation tiles; each block is one contiguous DMA.
            pl.BlockSpec((block_rows, _LANES), lambda i: (i, 0)),
        ],
        out_specs=pl.BlockSpec((block_rows, _LANES), lambda i: (i, 0)),
        compiler_params=pltpu.CompilerParams(
            dimension_semantics=("parallel",),
        ),
    )(w_flat, x2d)

    # Undo the lane-dense repack and restore the (N, 1) nn.Linear output.
    return y2d.reshape(-1)[:N].reshape(N, f_out)


def reference_forward(x, weight):
    # Pure-JAX reference of nn.Linear(n_features, n_out, bias=False).
    return x @ weight.T


if __name__ == "__main__":
    key = jax.random.PRNGKey(0)
    k_x, k_w, k_x2 = jax.random.split(key, 3)

    # GeneratorNet: n_features = 1, n_out = 1.  Small batch of 8.
    N, n_features, n_out = 8, 1, 1

    x = jax.random.normal(k_x, (N, n_features), dtype=jnp.float32)

    # Deterministic init mimicking nn.Linear default: U(-1/sqrt(fan_in), +)
    bound = 1.0 / (n_features ** 0.5)
    weight = jax.random.uniform(
        k_w, (n_out, n_features), dtype=jnp.float32, minval=-bound, maxval=bound
    )

    # Whole wrapper under jit so the pad/reshape/slice plumbing fuses.
    forward = jax.jit(generator_net_forward)                       # fast path
    forward_pallas = jax.jit(
        functools.partial(generator_net_forward, small_n_threshold=0)
    )                                                              # Pallas path

    # 1) Pallas kernel at the module's own shape (N=8).
    y = jax.block_until_ready(forward_pallas(x, weight))
    y_ref = reference_forward(x, weight)
    assert y.shape == (N, n_out)
    assert jnp.allclose(y, y_ref, atol=1e-6, rtol=1e-6), (y, y_ref)

    # 2) Small-N XLA fast path gives the identical result.
    y_fast = jax.block_until_ready(forward(x, weight))
    assert jnp.allclose(y_fast, y_ref, atol=1e-6, rtol=1e-6)

    # 3) Non-multiple-of-128 batch exercising a multi-step grid with a ragged
    #    last block (rows=40, block_rows=16, grid=3).
    N2 = 5000
    x2 = jax.random.normal(k_x2, (N2, n_features), dtype=jnp.float32)
    y2 = jax.block_until_ready(forward_pallas(x2, weight))
    y2_ref = reference_forward(x2, weight)
    assert y2.shape == (N2, n_out)
    assert jnp.allclose(y2, y2_ref, atol=1e-6, rtol=1e-6)

    print("KERNEL_OK")
</pallas_src>

<mosaic_0001>
module attributes {stable_mosaic.version = 11 : i64} {
  func.func @_scale_kernel(%arg0: i32, %arg1: memref<1xf32, #tpu.memory_space<smem>>, %arg2: memref<8x128xf32, #tpu.memory_space<vmem>>, %arg3: memref<8x128xf32, #tpu.memory_space<vmem>>) attributes {dimension_semantics = [#tpu.dimension_semantics<parallel>], iteration_bounds = array<i64: 1>, scalar_prefetch = 0 : i64, scratch_operands = 0 : i64, tpu.core_type = #tpu.core_type<tc>, window_params = [{transform_indices = @transform_0, window_bounds = array<i64: 1>}, {transform_indices = @transform_1, window_bounds = array<i64: 8, 128>}, {transform_indices = @transform_2, window_bounds = array<i64: 8, 128>}]} {
    %c0 = arith.constant 0 : index
    %c0_0 = arith.constant 0 : index
    %0 = vector.load %arg2[%c0, %c0_0] : memref<8x128xf32, #tpu.memory_space<vmem>>, vector<8x128xf32>
    %c0_1 = arith.constant 0 : index
    %1 = memref.load %arg1[%c0_1] : memref<1xf32, #tpu.memory_space<smem>>
    %2 = vector.broadcast %1 : f32 to vector<8x128xf32>
    %3 = arith.mulf %0, %2 : vector<8x128xf32>
    %c0_2 = arith.constant 0 : index
    %c0_3 = arith.constant 0 : index
    %4 = vector.load %arg3[%c0_2, %c0_3] : memref<8x128xf32, #tpu.memory_space<vmem>>, vector<8x128xf32>
    tpu.vector_store %arg3[%c0_2, %c0_3], %3 {strides = array<i32>} : memref<8x128xf32, #tpu.memory_space<vmem>>, vector<8x128xf32>,
    return
  }
  func.func @transform_0(%arg0: i32) -> i32 {
    %c0_i32 = arith.constant 0 : i32
    %c0_i32_0 = arith.constant 0 : i32
    return %c0_i32 : i32
  }
  func.func @transform_1(%arg0: i32) -> (i32, i32) {
    %c0_i32 = arith.constant 0 : i32
    %c0_i32_0 = arith.constant 0 : i32
    return %arg0, %c0_i32 : i32, i32
  }
  func.func @transform_2(%arg0: i32) -> (i32, i32) {
    %c0_i32 = arith.constant 0 : i32
    %c0_i32_0 = arith.constant 0 : i32
    return %arg0, %c0_i32 : i32, i32
  }
}

</mosaic_0001>

<bundles_post_ra>
// kernel: generator_net_forward.1
= control target key start
LH: loop header
LB: loop body
LE: loop exit
PB: predicated region body
PF: predicated region fallthrough
CT: control target
= control target key end

     0   :  { %s45_s0 = inlined_call_operand.<no memory space> [shape: f32[1], index: 0, kind: input, shape index: {}]   ;;  %s46_s1 = inlined_call_operand.vmem [shape: f32[8,128], index: 1, kind: input, shape index: {}]   ;;  %s47_s2 = inlined_call_operand.vmem [shape: f32[8,128], index: 2, kind: output, shape index: {}]  }
   0x1   :  { %v12_v0 = vld [vmem:[%s46_s1] sm:$0xff]  ;;  %v14_v1 = vstv %s45_s0 }
   0x2   :  { %v15_v2 = vmul.f32 %v14_v1, %v12_v0 }
   0x4   :  { %16 = vst [vmem:[%s47_s2] sm:$0xff] %v15_v2 }

</bundles_post_ra>
